<compile_context>
chip_gen: v7x
topology: tpu7x:2x2x1
jax: 0.10.0
libtpu: 0.0.40
codegen_flags: <defaults>
</compile_context>

<pallas_src>
import jax
import jax.numpy as jnp
from jax.experimental import pallas as pl
from jax.experimental.pallas import tpu as pltpu

INPUT_DIM = 561
HIDDEN_DIM = 256
OUTPUT_DIM = 6
BN_EPS = 1e-5

# Lane-aligned padded feature dims (perf only; padding is zero -> exact math).
INPUT_PAD = 640    # 561 -> 640 (multiple of 128)
OUTPUT_PAD = 128   # 6   -> 128 (one full lane group; lane-dense stores)

# Row layout of the consolidated per-feature parameter slab (8, HIDDEN_DIM).
_ROW_G1, _ROW_BE1, _ROW_G2, _ROW_BE2, _ROW_B3 = 0, 1, 2, 3, 4


def _bn_relu(h, gamma, beta):
    """Training-mode BatchNorm1d (biased batch stats) fused with ReLU.

    Single reduction pass; BN folded to scale/shift (2 full-width VPU ops)."""
    mean = jnp.mean(h, axis=0, keepdims=True)
    mean_sq = jnp.mean(h * h, axis=0, keepdims=True)
    var = jnp.maximum(mean_sq - mean * mean, 0.0)   # clamp f32 cancellation
    scale = jax.lax.rsqrt(var + BN_EPS) * gamma     # (1, H)
    shift = beta - mean * scale                     # (1, H)
    return jnp.maximum(h * scale + shift, 0.0)


def use_or_lose_kernel(x_ref, w1_ref, w2_ref, w3_ref, p_ref, o_ref):
    x = x_ref[...]                                  # bf16 (B, INPUT_PAD)

    # Per-feature parameter slab (one DMA): rows = [g1, be1, g2, be2, b3pad].
    g1 = p_ref[_ROW_G1:_ROW_G1 + 1, :]
    be1 = p_ref[_ROW_BE1:_ROW_BE1 + 1, :]
    g2 = p_ref[_ROW_G2:_ROW_G2 + 1, :]
    be2 = p_ref[_ROW_BE2:_ROW_BE2 + 1, :]
    b3 = p_ref[_ROW_B3:_ROW_B3 + 1, :OUTPUT_PAD]

    # ---- layer 1: masked linear (bf16 MXU, f32 acc) -> BN -> ReLU ----
    # b1 intentionally omitted: training-mode BN mean subtraction cancels it.
    h = jnp.dot(x, w1_ref[...], preferred_element_type=jnp.float32)
    h = _bn_relu(h, g1, be1)

    # ---- layer 2 (b2 likewise omitted) ----
    h = jnp.dot(h.astype(jnp.bfloat16), w2_ref[...],
                preferred_element_type=jnp.float32)
    h = _bn_relu(h, g2, be2)

    # ---- layer 3: logits (padded to 128 lanes; wrapper slices to OUTPUT_DIM) ----
    o_ref[...] = jnp.dot(h.astype(jnp.bfloat16), w3_ref[...],
                         preferred_element_type=jnp.float32) + b3


def prepare_params(p):
    """Fold masks into weights, transpose to (in, out), cast matmul operands to
    bf16, zero-pad ragged feature dims, and pack the small per-feature params
    (g1, be1, g2, be2, b3) into one (8, HIDDEN_DIM) f32 slab.  Do this once (or
    on the weight-update / mask-update path), not per forward call.

    Note: b1/b2 are *not* forwarded to the kernel; they are mathematically
    cancelled by training-mode BatchNorm."""
    w1 = (p["w1"] * p["m1"]).T.astype(jnp.bfloat16)           # (561, 256)
    w2 = (p["w2"] * p["m2"]).T.astype(jnp.bfloat16)           # (256, 256)
    w3 = (p["w3"] * p["m3"]).T.astype(jnp.bfloat16)           # (256, 6)
    w1 = jnp.pad(w1, ((0, INPUT_PAD - INPUT_DIM), (0, 0)))    # (640, 256)
    w3 = jnp.pad(w3, ((0, 0), (0, OUTPUT_PAD - OUTPUT_DIM)))  # (256, 128)

    slab = jnp.zeros((8, HIDDEN_DIM), jnp.float32)
    slab = slab.at[_ROW_G1, :].set(p["g1"].astype(jnp.float32))
    slab = slab.at[_ROW_BE1, :].set(p["be1"].astype(jnp.float32))
    slab = slab.at[_ROW_G2, :].set(p["g2"].astype(jnp.float32))
    slab = slab.at[_ROW_BE2, :].set(p["be2"].astype(jnp.float32))
    slab = slab.at[_ROW_B3, :OUTPUT_DIM].set(p["b3"].astype(jnp.float32))
    return {"w1": w1, "w2": w2, "w3": w3, "params": slab}


def use_or_lose_forward(x, kp):
    """x: (batch, INPUT_DIM) float32.  kp: output of prepare_params.
    For best perf callers should use batch sizes that are multiples of 16."""
    batch = x.shape[0]
    x_p = jnp.pad(x, ((0, 0), (0, INPUT_PAD - INPUT_DIM))).astype(jnp.bfloat16)

    args = (x_p, kp["w1"], kp["w2"], kp["w3"], kp["params"])
    vmem = pl.BlockSpec(memory_space=pltpu.MemorySpace.VMEM)

    flops = 2 * batch * (INPUT_PAD * HIDDEN_DIM
                         + HIDDEN_DIM * HIDDEN_DIM
                         + HIDDEN_DIM * OUTPUT_PAD)
    bytes_accessed = (sum(int(a.size) * a.dtype.itemsize for a in args)
                      + batch * OUTPUT_PAD * 4)

    out = pl.pallas_call(
        use_or_lose_kernel,
        out_shape=jax.ShapeDtypeStruct((batch, OUTPUT_PAD), jnp.float32),
        in_specs=[vmem] * len(args),
        out_specs=vmem,
        # 32 MiB scoped-VMEM limit is safe on v5e/v6e (128 MiB) and v7x
        # (64 MiB); the actual footprint at demo shapes is ~2 MiB.
        compiler_params=pltpu.CompilerParams(vmem_limit_bytes=32 << 20),
        cost_estimate=pl.CostEstimate(
            flops=flops,
            transcendentals=2 * HIDDEN_DIM,   # two rsqrt passes over HIDDEN_DIM
            bytes_accessed=bytes_accessed),
    )(*args)

    return out[:, :OUTPUT_DIM]


def init_params(key):
    """Deterministic synthetic parameters in PyTorch layout: weight (out, in)."""
    k1, k2, k3, kb1, kb2, kb3 = jax.random.split(key, 6)
    return {
        "w1": jax.random.normal(k1, (HIDDEN_DIM, INPUT_DIM), jnp.float32) * 0.05,
        "w2": jax.random.normal(k2, (HIDDEN_DIM, HIDDEN_DIM), jnp.float32) * 0.05,
        "w3": jax.random.normal(k3, (OUTPUT_DIM, HIDDEN_DIM), jnp.float32) * 0.05,
        "b1": jax.random.normal(kb1, (HIDDEN_DIM,), jnp.float32) * 0.01,
        "b2": jax.random.normal(kb2, (HIDDEN_DIM,), jnp.float32) * 0.01,
        "b3": jax.random.normal(kb3, (OUTPUT_DIM,), jnp.float32) * 0.01,
        "m1": jnp.ones((HIDDEN_DIM, INPUT_DIM), jnp.float32),   # mask_linear1
        "m2": jnp.ones((HIDDEN_DIM, HIDDEN_DIM), jnp.float32),  # mask_linear2
        "m3": jnp.ones((OUTPUT_DIM, HIDDEN_DIM), jnp.float32),  # mask_linear3
        "g1": jnp.ones((HIDDEN_DIM,), jnp.float32),             # bn1.weight
        "be1": jnp.zeros((HIDDEN_DIM,), jnp.float32),           # bn1.bias
        "g2": jnp.ones((HIDDEN_DIM,), jnp.float32),             # bn2.weight
        "be2": jnp.zeros((HIDDEN_DIM,), jnp.float32),           # bn2.bias
    }


def reference_forward_bf16(x, p):
    """Plain-JAX reference using the exact kernel math (bf16 matmul operands,
    biases dropped, scale/shift BN with clamped variance) for a tight check."""
    w1 = (p["w1"] * p["m1"]).T.astype(jnp.bfloat16)
    w2 = (p["w2"] * p["m2"]).T.astype(jnp.bfloat16)
    w3 = (p["w3"] * p["m3"]).T.astype(jnp.bfloat16)
    h = jnp.dot(x.astype(jnp.bfloat16), w1, preferred_element_type=jnp.float32)
    h = _bn_relu(h, p["g1"][None, :], p["be1"][None, :])
    h = jnp.dot(h.astype(jnp.bfloat16), w2, preferred_element_type=jnp.float32)
    h = _bn_relu(h, p["g2"][None, :], p["be2"][None, :])
    return jnp.dot(h.astype(jnp.bfloat16), w3,
                   preferred_element_type=jnp.float32) + p["b3"][None, :]


def reference_forward_f32(x, p):
    """Full-f32 reference matching PyTorch semantics exactly (training-mode BN,
    biases included -- they cancel under BN up to f32 rounding)."""
    def bn(h, g, b):
        mean = jnp.mean(h, axis=0, keepdims=True)
        var = jnp.mean((h - mean) ** 2, axis=0, keepdims=True)
        return (h - mean) * jax.lax.rsqrt(var + BN_EPS) * g + b

    h = x @ (p["w1"] * p["m1"]).T + p["b1"]
    h = jnp.maximum(bn(h, p["g1"], p["be1"]), 0.0)
    h = h @ (p["w2"] * p["m2"]).T + p["b2"]
    h = jnp.maximum(bn(h, p["g2"], p["be2"]), 0.0)
    return h @ (p["w3"] * p["m3"]).T + p["b3"]


if __name__ == "__main__":
    key = jax.random.PRNGKey(0)
    kx, kp_key = jax.random.split(key)

    batch = 16   # multiple of 16: full bf16 sublane packing for x
    x = jax.random.normal(kx, (batch, INPUT_DIM), jnp.float32)
    params = init_params(kp_key)
    kernel_params = prepare_params(params)

    out = use_or_lose_forward(x, kernel_params)
    out = jax.block_until_ready(out)
    assert out.shape == (batch, OUTPUT_DIM), out.shape

    # Tight check vs. a reference using identical math / bf16 matmul operands.
    ref_bf16 = reference_forward_bf16(x, params)
    assert jnp.allclose(out, ref_bf16, atol=1e-3, rtol=1e-3), \
        "mismatch vs bf16-matched reference"

    # Loose semantic check vs. the full-f32 PyTorch-equivalent reference
    # (bf16 matmul operands introduce small, bounded deviations).
    ref_f32 = reference_forward_f32(x, params)
    assert jnp.allclose(out, ref_f32, atol=5e-2, rtol=5e-2), \
        "mismatch vs f32 reference"

    print("KERNEL_OK")
</pallas_src>

<mosaic_0001>
module attributes {stable_mosaic.version = 11 : i64} {
  func.func @use_or_lose_kernel(%arg0: memref<16x640xbf16, #tpu.memory_space<vmem>>, %arg1: memref<640x256xbf16, #tpu.memory_space<vmem>>, %arg2: memref<256x256xbf16, #tpu.memory_space<vmem>>, %arg3: memref<256x128xbf16, #tpu.memory_space<vmem>>, %arg4: memref<8x256xf32, #tpu.memory_space<vmem>>, %arg5: memref<16x128xf32, #tpu.memory_space<vmem>>) attributes {dimension_semantics = [], scalar_prefetch = 0 : i64, scratch_operands = 0 : i64, tpu.core_type = #tpu.core_type<tc>} {
    %c0 = arith.constant 0 : index
    %c0_0 = arith.constant 0 : index
    %0 = vector.load %arg0[%c0, %c0_0] : memref<16x640xbf16, #tpu.memory_space<vmem>>, vector<16x640xbf16>
    %c0_1 = arith.constant 0 : index
    %c0_2 = arith.constant 0 : index
    %1 = vector.load %arg4[%c0_1, %c0_2] : memref<8x256xf32, #tpu.memory_space<vmem>>, vector<1x256xf32>
    %c1 = arith.constant 1 : index
    %c0_3 = arith.constant 0 : index
    %2 = vector.load %arg4[%c1, %c0_3] : memref<8x256xf32, #tpu.memory_space<vmem>>, vector<1x256xf32>
    %c2 = arith.constant 2 : index
    %c0_4 = arith.constant 0 : index
    %3 = vector.load %arg4[%c2, %c0_4] : memref<8x256xf32, #tpu.memory_space<vmem>>, vector<1x256xf32>
    %c3 = arith.constant 3 : index
    %c0_5 = arith.constant 0 : index
    %4 = vector.load %arg4[%c3, %c0_5] : memref<8x256xf32, #tpu.memory_space<vmem>>, vector<1x256xf32>
    %c4 = arith.constant 4 : index
    %c0_6 = arith.constant 0 : index
    %5 = vector.load %arg4[%c4, %c0_6] : memref<8x256xf32, #tpu.memory_space<vmem>>, vector<1x128xf32>
    %c0_7 = arith.constant 0 : index
    %c0_8 = arith.constant 0 : index
    %6 = vector.load %arg1[%c0_7, %c0_8] : memref<640x256xbf16, #tpu.memory_space<vmem>>, vector<640x256xbf16>
    %cst = arith.constant dense<0.000000e+00> : vector<16x256xf32>
    %7 = tpu.matmul %0, %6, %cst {dimension_numbers = #tpu.dot_dimension_numbers<[1], [0], [0], [1], [0, 0, 1, 1], [], []>} : vector<16x640xbf16>, vector<640x256xbf16>, vector<16x256xf32> -> vector<16x256xf32>
    %cst_9 = arith.constant dense<0.000000e+00> : vector<256xf32>
    %8 = vector.multi_reduction <add>, %7, %cst_9 [0] : vector<16x256xf32> to vector<256xf32>
    %9 = vector.shape_cast %8 : vector<256xf32> to vector<1x256xf32>
    %cst_10 = arith.constant 1.600000e+01 : f32
    %10 = vector.broadcast %cst_10 : f32 to vector<1x256xf32>
    %11 = arith.divf %9, %10 : vector<1x256xf32>
    %12 = arith.mulf %7, %7 : vector<16x256xf32>
    %cst_11 = arith.constant dense<0.000000e+00> : vector<256xf32>
    %13 = vector.multi_reduction <add>, %12, %cst_11 [0] : vector<16x256xf32> to vector<256xf32>
    %14 = vector.shape_cast %13 : vector<256xf32> to vector<1x256xf32>
    %cst_12 = arith.constant 1.600000e+01 : f32
    %15 = vector.broadcast %cst_12 : f32 to vector<1x256xf32>
    %16 = arith.divf %14, %15 : vector<1x256xf32>
    %17 = arith.mulf %11, %11 : vector<1x256xf32>
    %18 = arith.subf %16, %17 : vector<1x256xf32>
    %cst_13 = arith.constant 0.000000e+00 : f32
    %19 = vector.broadcast %cst_13 : f32 to vector<1x256xf32>
    %20 = arith.maximumf %18, %19 : vector<1x256xf32>
    %cst_14 = arith.constant 9.99999974E-6 : f32
    %21 = vector.broadcast %cst_14 : f32 to vector<1x256xf32>
    %22 = arith.addf %20, %21 : vector<1x256xf32>
    %23 = math.rsqrt %22 : vector<1x256xf32>
    %24 = arith.mulf %23, %1 : vector<1x256xf32>
    %25 = arith.mulf %11, %24 : vector<1x256xf32>
    %26 = arith.subf %2, %25 : vector<1x256xf32>
    %27 = vector.broadcast %24 : vector<1x256xf32> to vector<16x256xf32>
    %28 = arith.mulf %7, %27 : vector<16x256xf32>
    %29 = vector.broadcast %26 : vector<1x256xf32> to vector<16x256xf32>
    %30 = arith.addf %28, %29 : vector<16x256xf32>
    %cst_15 = arith.constant 0.000000e+00 : f32
    %31 = vector.broadcast %cst_15 : f32 to vector<16x256xf32>
    %32 = arith.maximumf %30, %31 : vector<16x256xf32>
    %33 = arith.truncf %32 : vector<16x256xf32> to vector<16x256xbf16>
    %c0_16 = arith.constant 0 : index
    %c0_17 = arith.constant 0 : index
    %34 = vector.load %arg2[%c0_16, %c0_17] : memref<256x256xbf16, #tpu.memory_space<vmem>>, vector<256x256xbf16>
    %cst_18 = arith.constant dense<0.000000e+00> : vector<16x256xf32>
    %35 = tpu.matmul %33, %34, %cst_18 {dimension_numbers = #tpu.dot_dimension_numbers<[1], [0], [0], [1], [0, 0, 1, 1], [], []>} : vector<16x256xbf16>, vector<256x256xbf16>, vector<16x256xf32> -> vector<16x256xf32>
    %cst_19 = arith.constant dense<0.000000e+00> : vector<256xf32>
    %36 = vector.multi_reduction <add>, %35, %cst_19 [0] : vector<16x256xf32> to vector<256xf32>
    %37 = vector.shape_cast %36 : vector<256xf32> to vector<1x256xf32>
    %cst_20 = arith.constant 1.600000e+01 : f32
    %38 = vector.broadcast %cst_20 : f32 to vector<1x256xf32>
    %39 = arith.divf %37, %38 : vector<1x256xf32>
    %40 = arith.mulf %35, %35 : vector<16x256xf32>
    %cst_21 = arith.constant dense<0.000000e+00> : vector<256xf32>
    %41 = vector.multi_reduction <add>, %40, %cst_21 [0] : vector<16x256xf32> to vector<256xf32>
    %42 = vector.shape_cast %41 : vector<256xf32> to vector<1x256xf32>
    %cst_22 = arith.constant 1.600000e+01 : f32
    %43 = vector.broadcast %cst_22 : f32 to vector<1x256xf32>
    %44 = arith.divf %42, %43 : vector<1x256xf32>
    %45 = arith.mulf %39, %39 : vector<1x256xf32>
    %46 = arith.subf %44, %45 : vector<1x256xf32>
    %cst_23 = arith.constant 0.000000e+00 : f32
    %47 = vector.broadcast %cst_23 : f32 to vector<1x256xf32>
    %48 = arith.maximumf %46, %47 : vector<1x256xf32>
    %cst_24 = arith.constant 9.99999974E-6 : f32
    %49 = vector.broadcast %cst_24 : f32 to vector<1x256xf32>
    %50 = arith.addf %48, %49 : vector<1x256xf32>
    %51 = math.rsqrt %50 : vector<1x256xf32>
    %52 = arith.mulf %51, %3 : vector<1x256xf32>
    %53 = arith.mulf %39, %52 : vector<1x256xf32>
    %54 = arith.subf %4, %53 : vector<1x256xf32>
    %55 = vector.broadcast %52 : vector<1x256xf32> to vector<16x256xf32>
    %56 = arith.mulf %35, %55 : vector<16x256xf32>
    %57 = vector.broadcast %54 : vector<1x256xf32> to vector<16x256xf32>
    %58 = arith.addf %56, %57 : vector<16x256xf32>
    %cst_25 = arith.constant 0.000000e+00 : f32
    %59 = vector.broadcast %cst_25 : f32 to vector<16x256xf32>
    %60 = arith.maximumf %58, %59 : vector<16x256xf32>
    %61 = arith.truncf %60 : vector<16x256xf32> to vector<16x256xbf16>
    %c0_26 = arith.constant 0 : index
    %c0_27 = arith.constant 0 : index
    %62 = vector.load %arg3[%c0_26, %c0_27] : memref<256x128xbf16, #tpu.memory_space<vmem>>, vector<256x128xbf16>
    %cst_28 = arith.constant dense<0.000000e+00> : vector<16x128xf32>
    %63 = tpu.matmul %61, %62, %cst_28 {dimension_numbers = #tpu.dot_dimension_numbers<[1], [0], [0], [1], [0, 0, 1, 1], [], []>} : vector<16x256xbf16>, vector<256x128xbf16>, vector<16x128xf32> -> vector<16x128xf32>
    %64 = vector.broadcast %5 : vector<1x128xf32> to vector<16x128xf32>
    %65 = arith.addf %63, %64 : vector<16x128xf32>
    %c0_29 = arith.constant 0 : index
    %c0_30 = arith.constant 0 : index
    %66 = vector.load %arg5[%c0_29, %c0_30] : memref<16x128xf32, #tpu.memory_space<vmem>>, vector<16x128xf32>
    tpu.vector_store %arg5[%c0_29, %c0_30], %65 {strides = array<i32>} : memref<16x128xf32, #tpu.memory_space<vmem>>, vector<16x128xf32>,
    return
  }
}

</mosaic_0001>

<bundles_post_ra>
// kernel: tpu_custom_call.1
= control target key start
LH: loop header
LB: loop body
LE: loop exit
PB: predicated region body
PF: predicated region fallthrough
CT: control target
= control target key end

     0   :  { %10 = vsyncpa [#allocation3], 0  ;;  %s2082_s0 = inlined_call_operand.hbm [shape: bf16[16,640], index: 0, kind: input, shape index: {}]   ;;  %s2083_s1 = inlined_call_operand.hbm [shape: bf16[640,256], index: 1, kind: input, shape index: {}]   ;;  %s2084_s2 = inlined_call_operand.hbm [shape: bf16[256,256], index: 2, kind: input, shape index: {}]   ;;  %s2085_s3 = inlined_call_operand.hbm [shape: bf16[256,128], index: 3, kind: input, shape index: {}]   ;;  %s2086_s4 = inlined_call_operand.hbm [shape: f32[8,256], index: 4, kind: input, shape index: {}]   ;;  %s2087_s5 = inlined_call_operand.hbm [shape: f32[16,128], index: 5, kind: output, shape index: {}]  }
   0x1   :  { %11 = vsyncpa [#allocation6], 0 }
   0x2   :  { %12 = vsyncpa [#allocation9], 0 }
   0x3   :  { %13 = vsyncpa [#allocation4], 0  ;;  %s1905_s18 = smov [#allocation5]   ;;  %s1765_s22 = scalar_lea.hbm %s2083_s1, 10240 }
   0x4   :  { %s31_s19 = sshll.u32 %s1905_s18, 4  ;;  %p1766_p0 = scmp.ne.s32.totalorder %s2083_s1, %s1765_s22  ;;  %s32_s19 = int_to_ptr.vmem [resolvable:$true] %s31_s19 }
   0x5   :  { %p1769_p1 = scmp.lt.u32.totalorder %s1765_s22, %s2083_s1 }
   0x7   :  { %p1771_p2 = pnand %p1769_p1, %p1766_p0 }
   0x9   :  { %1774 = shalt.err (!%p1771_p2)
}
   0xa   :  { %s1775_s27 = scalar_lea.vmem %s32_s19, 10240  ;;  %p1780_p4 = scmp.lt.s32.totalorder %s32_s19, %s32_s19 }
   0xb   :  { %p1776_p3 = scmp.ne.s32.totalorder %s32_s19, %s1775_s27  ;;  %p1781_p5 = scmp.lt.s32.totalorder %s1775_s27, %s1775_s27 }
   0xd   :  { %p1782_p6 = por %p1781_p5, %p1780_p4 }
   0xf   :  { %p1783_p7 = pnand %p1782_p6, %p1776_p3 }
  0x11   :  { %1786 = shalt.err (!%p1783_p7)
}
  0x12   :  { %s1906_s28 = smov 128   ;;  %s1907_s29 = smov 8  }
  0x13   :  { %37 = dma.hbm_to_vmem [thread:$0]  %s2083_s1, 10240, %s32_s19, [#allocation6], %s1906_s28, %s1906_s28, %s1907_s29  }
  0x14   :  { %s1908_s7 = smov [#allocation8]   ;;  %s1787_s11 = scalar_lea.hbm %s2085_s3, 2048 }
  0x15   :  { %s55_s8 = sshll.u32 %s1908_s7, 4  ;;  %p1788_p8 = scmp.ne.s32.totalorder %s2085_s3, %s1787_s11  ;;  %s56_s8 = int_to_ptr.vmem [resolvable:$true] %s55_s8 }
  0x16   :  { %p1791_p9 = scmp.lt.u32.totalorder %s1787_s11, %s2085_s3 }
  0x18   :  { %p1793_p10 = pnand %p1791_p9, %p1788_p8 }
  0x1a   :  { %1796 = shalt.err (!%p1793_p10)
}
  0x1b   :  { %s1797_s16 = scalar_lea.vmem %s56_s8, 2048  ;;  %p1802_p12 = scmp.lt.s32.totalorder %s56_s8, %s56_s8 }
  0x1c   :  { %p1798_p11 = scmp.ne.s32.totalorder %s56_s8, %s1797_s16  ;;  %p1803_p13 = scmp.lt.s32.totalorder %s1797_s16, %s1797_s16 }
  0x1e   :  { %p1804_p0 = por %p1803_p13, %p1802_p12 }
  0x20   :  { %p1805_p1 = pnand %p1804_p0, %p1798_p11 }
  0x22   :  { %1808 = shalt.err (!%p1805_p1)
}
  0x23   :  { %s1909_s1 = smov 64   ;;  %s1910_s17 = smov 4  }
  0x24   :  { %61 = dma.hbm_to_vmem [thread:$0]  %s2085_s3, 2048, %s56_s8, [#allocation9], %s1909_s1, %s1909_s1, %s1910_s17  }
  0x25   :  { %s1911_s20 = smov [#allocation2]   ;;  %s1809_s24 = scalar_lea.hbm %s2082_s0, 640 }
  0x26   :  { %s19_s21 = sshll.u32 %s1911_s20, 4  ;;  %p1810_p2 = scmp.ne.s32.totalorder %s2082_s0, %s1809_s24  ;;  %s20_s21 = int_to_ptr.vmem [resolvable:$true] %s19_s21 }
  0x27   :  { %p1813_p3 = scmp.lt.u32.totalorder %s1809_s24, %s2082_s0 }
  0x29   :  { %p1815_p4 = pnand %p1813_p3, %p1810_p2 }
  0x2b   :  { %1818 = shalt.err (!%p1815_p4)
}
  0x2c   :  { %s1819_s6 = scalar_lea.vmem %s20_s21, 640  ;;  %p1824_p6 = scmp.lt.s32.totalorder %s20_s21, %s20_s21 }
  0x2d   :  { %p1820_p5 = scmp.ne.s32.totalorder %s20_s21, %s1819_s6  ;;  %p1825_p7 = scmp.lt.s32.totalorder %s1819_s6, %s1819_s6 }
  0x2f   :  { %p1826_p8 = por %p1825_p7, %p1824_p6 }
  0x31   :  { %p1827_p9 = pnand %p1826_p8, %p1820_p5 }
  0x33   :  { %1830 = shalt.err (!%p1827_p9)
}
  0x34   :  { %s1912_s3 = smov 320   ;;  %s1913_s7 = smov 20  }
  0x35   :  { %25 = dma.hbm_to_vmem [thread:$0]  %s2082_s0, 640, %s20_s21, [#allocation3], %s1912_s3, %s1912_s3, %s1913_s7  }
  0x36   :  { %s1914_s10 = smov [#allocation7]   ;;  %s1915_s12 = smov [#allocation10]  }
  0x37   :  { %s43_s11 = sshll.u32 %s1914_s10, 4  ;;  %s68_s13 = sshll.u32 %s1915_s12, 4  ;;  %s44_s11 = int_to_ptr.vmem [resolvable:$true] %s43_s11  ;;  %s69_s13 = int_to_ptr.vmem [resolvable:$true] %s68_s13 }
  0x38   :  { %s1831_s16 = scalar_lea.hbm %s2084_s2, 4096 }
  0x39   :  { %p1832_p10 = scmp.ne.s32.totalorder %s2084_s2, %s1831_s16  ;;  %p1835_p11 = scmp.lt.u32.totalorder %s1831_s16, %s2084_s2 }
  0x3b   :  { %p1837_p12 = pnand %p1835_p11, %p1832_p10 }
  0x3d   :  { %1840 = shalt.err (!%p1837_p12)
}
  0x3e   :  { %s1841_s0 = scalar_lea.vmem %s44_s11, 4096  ;;  %p1846_p0 = scmp.lt.s32.totalorder %s44_s11, %s44_s11 }
  0x3f   :  { %p1842_p13 = scmp.ne.s32.totalorder %s44_s11, %s1841_s0  ;;  %p1847_p1 = scmp.lt.s32.totalorder %s1841_s0, %s1841_s0 }
  0x41   :  { %p1848_p2 = por %p1847_p1, %p1846_p0 }
  0x43   :  { %p1849_p3 = pnand %p1848_p2, %p1842_p13 }
  0x45   :  { %1852 = shalt.err (!%p1849_p3)
}
  0x46   :  { %49 = dma.hbm_to_vmem [thread:$0]  %s2084_s2, 4096, %s44_s11, [#allocation6], %s1906_s28, %s1906_s28, %s1907_s29  }
  0x47   :  { %s1853_s24 = scalar_lea.hbm %s2086_s4, 256 }
  0x48   :  { %p1854_p4 = scmp.ne.s32.totalorder %s2086_s4, %s1853_s24  ;;  %p1857_p5 = scmp.lt.u32.totalorder %s1853_s24, %s2086_s4 }
  0x4a   :  { %p1859_p6 = pnand %p1857_p5, %p1854_p4 }
  0x4c   :  { %1862 = shalt.err (!%p1859_p6)
}
  0x4d   :  { %s1863_s6 = scalar_lea.vmem %s69_s13, 256  ;;  %p1868_p8 = scmp.lt.s32.totalorder %s69_s13, %s69_s13 }
  0x4e   :  { %p1864_p7 = scmp.ne.s32.totalorder %s69_s13, %s1863_s6  ;;  %p1869_p9 = scmp.lt.s32.totalorder %s1863_s6, %s1863_s6 }
  0x50   :  { %p1870_p10 = por %p1869_p9, %p1868_p8 }
  0x52   :  { %p1871_p11 = pnand %p1870_p10, %p1864_p7 }
  0x54   :  { %1874 = shalt.err (!%p1871_p11)
}
  0x55   :  { %71 = dma.hbm_to_vmem [thread:$0]  %s2086_s4, 256, %s69_s13, [#allocation9]  }
  0x56   :  { %1897 = dma.done.wait [#allocation3], 640  }
  0x57   :  { %1898 = vsyncadd [#allocation3], 4294966656 }
  0x58   :  { %1899 = dma.done.wait [#allocation6], 14336  }
  0x59   :  { %1900 = vsyncadd [#allocation6], 4294952960 }
  0x5a   :  { %1901 = dma.done.wait [#allocation9], 2304  }
  0x5b   :  { %1902 = vsyncadd [#allocation9], 4294964992  ;;  %v1916_v0 = vmov 0   ;;  %v1566_v1 = vld [vmem:[#allocation5 + $0x4] ss:$8 sps:$4 sm:$0xff]   ;;  %s1918_s4 = smov [#allocation11]  }
  0x5c   :  { %726 = vmatprep.mubr.bf16.mxu1 %v1916_v0  ;;  %v1568_v2 = vld [vmem:[#allocation5] ss:$8 sps:$4 sm:$0xff]   ;;  %608 = vmatprep.subr.bf16.mxu0 %v1566_v1  ;;  %v1569_v3 = vld [vmem:[#allocation5 + $0x14] ss:$8 sps:$4 sm:$0xff]   ;;  %v1571_v4 = vld [vmem:[#allocation5 + $0x10] ss:$8 sps:$4 sm:$0xff]  }
  0x5d   :  { %609 = vmatpush1.bf16.msra.mxu0 %v1568_v2  ;;  %v1572_v5 = vld [vmem:[#allocation5 + $0x24] ss:$8 sps:$4 sm:$0xff]   ;;  %v1574_v6 = vld [vmem:[#allocation5 + $0x20] ss:$8 sps:$4 sm:$0xff]   ;;  %v1575_v7 = vld [vmem:[#allocation5 + $0x34] ss:$8 sps:$4 sm:$0xff]  }
  0x5e   :  { %610 = vmatprep.subr.bf16.mxu0 %v1569_v3  ;;  %v1577_v8 = vld [vmem:[#allocation5 + $0x30] ss:$8 sps:$4 sm:$0xff]   ;;  %v1578_v9 = vld [vmem:[#allocation5 + $0x44] ss:$8 sps:$4 sm:$0xff]   ;;  %v1580_v10 = vld [vmem:[#allocation5 + $0x40] ss:$8 sps:$4 sm:$0xff]  }
  0x5f   :  { %v1581_v11 = vld [vmem:[#allocation5 + $0x54] ss:$8 sps:$4 sm:$0xff]   ;;  %v1583_v12 = vld [vmem:[#allocation5 + $0x50] ss:$8 sps:$4 sm:$0xff]   ;;  %v1584_v13 = vld [vmem:[#allocation5 + $0x64] ss:$8 sps:$4 sm:$0xff]  }
  0x60   :  { %v1616_v14 = vld [vmem:[#allocation2 + $0x4] ss:$20 sps:$4 sm:$0xff]   ;;  %v1586_v15 = vld [vmem:[#allocation5 + $0x60] ss:$8 sps:$4 sm:$0xff]   ;;  %v1590_v18 = vld [vmem:[#allocation5 + $0x84] ss:$8 sps:$4 sm:$0xff]  }
  0x61   :  { %611 = vmatpush1.bf16.msra.mxu0 %v1571_v4  ;;  %v1587_v16 = vld [vmem:[#allocation5 + $0x74] ss:$8 sps:$4 sm:$0xff]   ;;  %640 = vmatprep.mubr.bf16.mxu0 %v1616_v14  ;;  %v1589_v17 = vld [vmem:[#allocation5 + $0x70] ss:$8 sps:$4 sm:$0xff]   ;;  %v1592_v19 = vld [vmem:[#allocation5 + $0x80] ss:$8 sps:$4 sm:$0xff]  }
  0x62   :  { %612 = vmatprep.subr.bf16.mxu0 %v1572_v5  ;;  %v1593_v20 = vld [vmem:[#allocation5 + $0x94] ss:$8 sps:$4 sm:$0xff]   ;;  %v1641_v21 = vld [vmem:[#allocation5 + $0x204] ss:$8 sps:$4 sm:$0xff]   ;;  %v1643_v22 = vld [vmem:[#allocation5 + $0x200] ss:$8 sps:$4 sm:$0xff]  }
  0x63   :  { %v1595_v23 = vld [vmem:[#allocation5 + $0x90] ss:$8 sps:$4 sm:$0xff]   ;;  %v1596_v24 = vld [vmem:[#allocation5 + $0xa4] ss:$8 sps:$4 sm:$0xff]   ;;  %694 = vmatprep.subr.bf16.mxu1 %v1641_v21  ;;  %v1647_v25 = vld [vmem:[#allocation5 + $0x214] ss:$8 sps:$4 sm:$0xff]  }
  0x64   :  { %695 = vmatpush1.bf16.msra.mxu1 %v1643_v22  ;;  %v1649_v26 = vld [vmem:[#allocation5 + $0x210] ss:$8 sps:$4 sm:$0xff]   ;;  %v1598_v27 = vld [vmem:[#allocation5 + $0xa0] ss:$8 sps:$4 sm:$0xff]   ;;  %v1653_v28 = vld [vmem:[#allocation5 + $0x224] ss:$8 sps:$4 sm:$0xff]  }
  0x65   :  { %613 = vmatpush1.bf16.msra.mxu0 %v1574_v6  ;;  %696 = vmatprep.subr.bf16.mxu1 %v1647_v25  ;;  %v1599_v29 = vld [vmem:[#allocation5 + $0xb4] ss:$8 sps:$4 sm:$0xff]   ;;  %v1655_v30 = vld [vmem:[#allocation5 + $0x220] ss:$8 sps:$4 sm:$0xff]   ;;  %v1601_v32 = vld [vmem:[#allocation5 + $0xb0] ss:$8 sps:$4 sm:$0xff]  }
  0x66   :  { %614 = vmatprep.subr.bf16.mxu0 %v1575_v7  ;;  %v1659_v31 = vld [vmem:[#allocation5 + $0x234] ss:$8 sps:$4 sm:$0xff]   ;;  %v1602_v33 = vld [vmem:[#allocation5 + $0xc4] ss:$8 sps:$4 sm:$0xff]   ;;  %v1661_v34 = vld [vmem:[#allocation5 + $0x230] ss:$8 sps:$4 sm:$0xff]  }
  0x67   :  { %v1665_v35 = vld [vmem:[#allocation5 + $0x244] ss:$8 sps:$4 sm:$0xff]   ;;  %v1604_v36 = vld [vmem:[#allocation5 + $0xc0] ss:$8 sps:$4 sm:$0xff]   ;;  %v1605_v37 = vld [vmem:[#allocation5 + $0xd4] ss:$8 sps:$4 sm:$0xff]  }
  0x68   :  { %697 = vmatpush1.bf16.msra.mxu1 %v1649_v26  ;;  %v1667_v38 = vld [vmem:[#allocation5 + $0x240] ss:$8 sps:$4 sm:$0xff]   ;;  %v1671_v39 = vld [vmem:[#allocation5 + $0x254] ss:$8 sps:$4 sm:$0xff]   ;;  %v1607_v40 = vld [vmem:[#allocation5 + $0xd0] ss:$8 sps:$4 sm:$0xff]  }
  0x69   :  { %615 = vmatpush1.bf16.msra.mxu0 %v1577_v8  ;;  %698 = vmatprep.subr.bf16.mxu1 %v1653_v28  ;;  %v1608_v41 = vld [vmem:[#allocation5 + $0xe4] ss:$8 sps:$4 sm:$0xff]   ;;  %v1673_v42 = vld [vmem:[#allocation5 + $0x250] ss:$8 sps:$4 sm:$0xff]   ;;  %v1610_v43 = vld [vmem:[#allocation5 + $0xe0] ss:$8 sps:$4 sm:$0xff]  }
  0x6a   :  { %616 = vmatprep.subr.bf16.mxu0 %v1578_v9  ;;  %v1677_v44 = vld [vmem:[#allocation5 + $0x264] ss:$8 sps:$4 sm:$0xff]   ;;  %v1611_v45 = vld [vmem:[#allocation5 + $0xf4] ss:$8 sps:$4 sm:$0xff]   ;;  %v1679_v46 = vld [vmem:[#allocation5 + $0x260] ss:$8 sps:$4 sm:$0xff]  }
  0x6b   :  { %v1683_v47 = vld [vmem:[#allocation5 + $0x274] ss:$8 sps:$4 sm:$0xff]   ;;  %v1613_v48 = vld [vmem:[#allocation5 + $0xf0] ss:$8 sps:$4 sm:$0xff]   ;;  %v1619_v49 = vld [vmem:[#allocation5 + $0x104] ss:$8 sps:$4 sm:$0xff]  }
  0x6c   :  { %699 = vmatpush1.bf16.msra.mxu1 %v1655_v30  ;;  %v1685_v50 = vld [vmem:[#allocation5 + $0x270] ss:$8 sps:$4 sm:$0xff]   ;;  %v1617_v52 = vld [vmem:[#allocation5 + $0x100] ss:$8 sps:$4 sm:$0xff]   ;;  %v1622_v54 = vld [vmem:[#allocation5 + $0x114] ss:$8 sps:$4 sm:$0xff]  }
  0x6d   :  { %617 = vmatpush1.bf16.msra.mxu0 %v1580_v10  ;;  %700 = vmatprep.subr.bf16.mxu1 %v1659_v31  ;;  %v1614_v51 = vld [vmem:[#allocation2] ss:$20 sps:$4 sm:$0xff]   ;;  %v1689_v55 = vld [vmem:[#allocation2 + $0x10] ss:$20 sps:$4 sm:$0xff]   ;;  %v1690_v21 = vld [vmem:[#allocation2 + $0x8] ss:$20 sps:$4 sm:$0xff]  }
  0x6e   :  { %618 = vmatprep.subr.bf16.mxu0 %v1581_v11  ;;  %v1692_v53 = vld [vmem:[#allocation2 + $0xc] ss:$20 sps:$4 sm:$0xff]   ;;  %v1623_v58 = vld [vmem:[#allocation5 + $0x120] ss:$8 sps:$4 sm:$0xff]   ;;  %v1628_v59 = vld [vmem:[#allocation5 + $0x134] ss:$8 sps:$4 sm:$0xff]  }
  0x6f   :  { %v1620_v56 = vld [vmem:[#allocation5 + $0x110] ss:$8 sps:$4 sm:$0xff]   ;;  %v1625_v57 = vld [vmem:[#allocation5 + $0x124] ss:$8 sps:$4 sm:$0xff]   ;;  %v1629_v62 = vld [vmem:[#allocation5 + $0x140] ss:$8 sps:$4 sm:$0xff]  }
  0x70   :  { %701 = vmatpush1.bf16.msra.mxu1 %v1661_v34  ;;  %v1626_v60 = vld [vmem:[#allocation5 + $0x130] ss:$8 sps:$4 sm:$0xff]   ;;  %v1631_v61 = vld [vmem:[#allocation5 + $0x144] ss:$8 sps:$4 sm:$0xff]   ;;  %v1634_v63 = vld [vmem:[#allocation5 + $0x154] ss:$8 sps:$4 sm:$0xff]  }
  0x71   :  { %619 = vmatpush1.bf16.msra.mxu0 %v1583_v12  ;;  %702 = vmatprep.subr.bf16.mxu1 %v1665_v35  ;;  %v1632_v0 = vld [vmem:[#allocation5 + $0x150] ss:$8 sps:$4 sm:$0xff]   ;;  %v1637_v1 = vld [vmem:[#allocation5 + $0x164] ss:$8 sps:$4 sm:$0xff]   ;;  %v1635_v2 = vld [vmem:[#allocation5 + $0x160] ss:$8 sps:$4 sm:$0xff]  }
  0x72   :  { %620 = vmatprep.subr.bf16.mxu0 %v1584_v13  ;;  %v1640_v3 = vld [vmem:[#allocation5 + $0x174] ss:$8 sps:$4 sm:$0xff]   ;;  %v1638_v4 = vld [vmem:[#allocation5 + $0x170] ss:$8 sps:$4 sm:$0xff]   ;;  %v1646_v5 = vld [vmem:[#allocation5 + $0x184] ss:$8 sps:$4 sm:$0xff]  }
  0x73   :  { %v1644_v6 = vld [vmem:[#allocation5 + $0x180] ss:$8 sps:$4 sm:$0xff]   ;;  %v1652_v7 = vld [vmem:[#allocation5 + $0x194] ss:$8 sps:$4 sm:$0xff]   ;;  %v1650_v8 = vld [vmem:[#allocation5 + $0x190] ss:$8 sps:$4 sm:$0xff]  }
  0x74   :  { %703 = vmatpush1.bf16.msra.mxu1 %v1667_v38  ;;  %v1658_v9 = vld [vmem:[#allocation5 + $0x1a4] ss:$8 sps:$4 sm:$0xff]   ;;  %v1656_v10 = vld [vmem:[#allocation5 + $0x1a0] ss:$8 sps:$4 sm:$0xff]   ;;  %v1664_v11 = vld [vmem:[#allocation5 + $0x1b4] ss:$8 sps:$4 sm:$0xff]  }
  0x75   :  { %621 = vmatpush1.bf16.msra.mxu0 %v1586_v15  ;;  %704 = vmatprep.subr.bf16.mxu1 %v1671_v39  ;;  %v1662_v12 = vld [vmem:[#allocation5 + $0x1b0] ss:$8 sps:$4 sm:$0xff]   ;;  %v1670_v13 = vld [vmem:[#allocation5 + $0x1c4] ss:$8 sps:$4 sm:$0xff]   ;;  %v1668_v14 = vld [vmem:[#allocation5 + $0x1c0] ss:$8 sps:$4 sm:$0xff]  }
  0x76   :  { %622 = vmatprep.subr.bf16.mxu0 %v1587_v16  ;;  %v1676_v15 = vld [vmem:[#allocation5 + $0x1d4] ss:$8 sps:$4 sm:$0xff]   ;;  %v1674_v16 = vld [vmem:[#allocation5 + $0x1d0] ss:$8 sps:$4 sm:$0xff]   ;;  %v1693_v22 = vld [vmem:[#allocation7] ss:$8 sps:$4 sm:$0xff]  }
  0x77   :  { %v1696_v25 = vld [vmem:[#allocation7 + $0x10] ss:$8 sps:$4 sm:$0xff]   ;;  %v1701_v26 = vld [vmem:[#allocation7 + $0x24] ss:$8 sps:$4 sm:$0xff]   ;;  %v1704_v28 = vld [vmem:[#allocation7 + $0x34] ss:$8 sps:$4 sm:$0xff]  }
  0x78   :  { %705 = vmatpush1.bf16.msra.mxu1 %v1673_v42  ;;  %v1707_v30 = vld [vmem:[#allocation7 + $0x44] ss:$8 sps:$4 sm:$0xff]   ;;  %v1705_v31 = vld [vmem:[#allocation7 + $0x40] ss:$8 sps:$4 sm:$0xff]   ;;  %s1375_s7 = sshll.u32 %s1918_s4, 4  ;;  %s1376_s7 = int_to_ptr.vmem [resolvable:$true] %s1375_s7 }
  0x79   :  { %623 = vmatpush1.bf16.msra.mxu0 %v1589_v17  ;;  %706 = vmatprep.subr.bf16.mxu1 %v1677_v44  ;;  %v1682_v17 = vld [vmem:[#allocation5 + $0x1e4] ss:$8 sps:$4 sm:$0xff]   ;;  %v1711_v35 = vld [vmem:[#allocation7 + $0x60] ss:$8 sps:$4 sm:$0xff]   ;;  %v1728_v44 = vld [vmem:[#allocation7 + $0xb4] ss:$8 sps:$4 sm:$0xff]   ;;  %p1880_p13 = scmp.lt.s32.totalorder %s1376_s7, %s1376_s7 }
  0x7a   :  { %624 = vmatprep.subr.bf16.mxu0 %v1590_v18  ;;  %v1680_v18 = vld [vmem:[#allocation5 + $0x1e0] ss:$8 sps:$4 sm:$0xff]   ;;  %v1713_v34 = vld [vmem:[#allocation7 + $0x64] ss:$8 sps:$4 sm:$0xff]   ;;  %s1875_s8 = scalar_lea.vmem %s1376_s7, 256 }
  0x7b   :  { %v1719_v38 = vld [vmem:[#allocation7 + $0x84] ss:$8 sps:$4 sm:$0xff]   ;;  %v1717_v39 = vld [vmem:[#allocation7 + $0x80] ss:$8 sps:$4 sm:$0xff]   ;;  %p1876_p12 = scmp.ne.s32.totalorder %s1376_s7, %s1875_s8  ;;  %p1881_p0 = scmp.lt.s32.totalorder %s1875_s8, %s1875_s8 }
  0x7c   :  { %707 = vmatpush1.bf16.msra.mxu1 %v1679_v46  ;;  %v1725_v42 = vld [vmem:[#allocation7 + $0xa4] ss:$8 sps:$4 sm:$0xff]  }
  0x7d   :  { %625 = vmatpush1.bf16.msra.mxu0 %v1592_v19  ;;  %708 = vmatprep.subr.bf16.mxu1 %v1683_v47  ;;  %v1688_v19 = vld [vmem:[#allocation5 + $0x1f4] ss:$8 sps:$4 sm:$0xff]   ;;  %v1731_v46 = vld [vmem:[#allocation7 + $0xc4] ss:$8 sps:$4 sm:$0xff]   ;;  %v1729_v47 = vld [vmem:[#allocation7 + $0xc0] ss:$8 sps:$4 sm:$0xff]   ;;  %p1882_p1 = por %p1881_p0, %p1880_p13 }
  0x7e   :  { %626 = vmatprep.subr.bf16.mxu0 %v1593_v20  ;;  %v1686_v20 = vld [vmem:[#allocation5 + $0x1f0] ss:$8 sps:$4 sm:$0xff]  }
  0x7f   :  { %p1883_p2 = pnand %p1882_p1, %p1876_p12 }
  0x80   :  { %709 = vmatpush1.bf16.msra.mxu1 %v1685_v50  ;;  %v1737_v50 = vld [vmem:[#allocation7 + $0xe4] ss:$8 sps:$4 sm:$0xff]  }
  0x81   :  { %627 = vmatpush1.bf16.msra.mxu0 %v1595_v23  ;;  %v1695_v23 = vld [vmem:[#allocation7 + $0x4] ss:$8 sps:$4 sm:$0xff]  }
  0x82   :  { %628 = vmatprep.subr.bf16.mxu0 %v1596_v24  ;;  %1043 = vmatprep.subr.bf16.mxu1 %v1695_v23  ;;  %v1698_v24 = vld [vmem:[#allocation7 + $0x14] ss:$8 sps:$4 sm:$0xff]  }
  0x83   :  { %727 = vmatmul.mubr.bf16.vlgmr.msra.gmra.mrb[0].mxu1 %v1689_v55 }
  0x84   :  { %1044 = vmatpush1.bf16.msra.mxu1 %v1693_v22 }
  0x85   :  { %629 = vmatpush1.bf16.msra.mxu0 %v1598_v27  ;;  %1045 = vmatprep.subr.bf16.mxu1 %v1698_v24  ;;  %v1699_v27 = vld [vmem:[#allocation7 + $0x20] ss:$8 sps:$4 sm:$0xff]  }
  0x86   :  { %630 = vmatprep.subr.bf16.mxu0 %v1599_v29  ;;  %v1702_v29 = vld [vmem:[#allocation7 + $0x30] ss:$8 sps:$4 sm:$0xff]  }
  0x88   :  { %1046 = vmatpush1.bf16.msra.mxu1 %v1696_v25 }
  0x89   :  { %631 = vmatpush1.bf16.msra.mxu0 %v1601_v32  ;;  %1047 = vmatprep.subr.bf16.mxu1 %v1701_v26  ;;  %v1710_v32 = vld [vmem:[#allocation7 + $0x54] ss:$8 sps:$4 sm:$0xff]  }
  0x8a   :  { %632 = vmatprep.subr.bf16.mxu0 %v1602_v33  ;;  %v1708_v33 = vld [vmem:[#allocation7 + $0x50] ss:$8 sps:$4 sm:$0xff]  }
  0x8c   :  { %1048 = vmatpush1.bf16.msra.mxu1 %v1699_v27 }
  0x8d   :  { %633 = vmatpush1.bf16.msra.mxu0 %v1604_v36  ;;  %1049 = vmatprep.subr.bf16.mxu1 %v1704_v28  ;;  %v1716_v36 = vld [vmem:[#allocation7 + $0x74] ss:$8 sps:$4 sm:$0xff]  }
  0x8e   :  { %634 = vmatprep.subr.bf16.mxu0 %v1605_v37  ;;  %v1714_v37 = vld [vmem:[#allocation7 + $0x70] ss:$8 sps:$4 sm:$0xff]  }
  0x90   :  { %1050 = vmatpush1.bf16.msra.mxu1 %v1702_v29 }
  0x91   :  { %635 = vmatpush1.bf16.msra.mxu0 %v1607_v40  ;;  %1051 = vmatprep.subr.bf16.mxu1 %v1707_v30  ;;  %v1722_v40 = vld [vmem:[#allocation7 + $0x94] ss:$8 sps:$4 sm:$0xff]  }
  0x92   :  { %636 = vmatprep.subr.bf16.mxu0 %v1608_v41  ;;  %v1720_v41 = vld [vmem:[#allocation7 + $0x90] ss:$8 sps:$4 sm:$0xff]  }
  0x94   :  { %1052 = vmatpush1.bf16.msra.mxu1 %v1705_v31 }
  0x95   :  { %637 = vmatpush1.bf16.msra.mxu0 %v1610_v43  ;;  %1053 = vmatprep.subr.bf16.mxu1 %v1710_v32  ;;  %v1723_v43 = vld [vmem:[#allocation7 + $0xa0] ss:$8 sps:$4 sm:$0xff]  }
  0x96   :  { %638 = vmatprep.subr.bf16.mxu0 %v1611_v45  ;;  %v1726_v45 = vld [vmem:[#allocation7 + $0xb0] ss:$8 sps:$4 sm:$0xff]  }
  0x98   :  { %1054 = vmatpush1.bf16.msra.mxu1 %v1708_v33 }
  0x99   :  { %639 = vmatpush1.bf16.msra.mxu0 %v1613_v48  ;;  %1055 = vmatprep.subr.bf16.mxu1 %v1713_v34  ;;  %v1734_v48 = vld [vmem:[#allocation7 + $0xd4] ss:$8 sps:$4 sm:$0xff]  }
  0x9a   :  { %651 = vmatprep.subr.bf16.mxu0 %v1619_v49  ;;  %v1732_v49 = vld [vmem:[#allocation7 + $0xd0] ss:$8 sps:$4 sm:$0xff]  }
  0x9c   :  { %641 = vmatmul.mubr.bf16.vlgmr.msra.gmra.mrb[0].mxu0 %v1614_v51  ;;  %1056 = vmatpush1.bf16.msra.mxu1 %v1711_v35  ;;  %v1735_v51 = vld [vmem:[#allocation7 + $0xe0] ss:$8 sps:$4 sm:$0xff]  }
  0x9d   :  { %652 = vmatpush1.bf16.msra.mxu0 %v1617_v52  ;;  %683 = vmatprep.mubr.bf16.mxu0 %v1692_v53  ;;  %v1740_v52 = vld [vmem:[#allocation7 + $0xf4] ss:$8 sps:$4 sm:$0xff]   ;;  %v1738_v53 = vld [vmem:[#allocation7 + $0xf0] ss:$8 sps:$4 sm:$0xff]  }
  0x9e   :  { %653 = vmatprep.subr.bf16.mxu0 %v1622_v54  ;;  %1057 = vmatprep.subr.bf16.mxu1 %v1716_v36 }
  0xa0   :  { %1058 = vmatpush1.bf16.msra.mxu1 %v1714_v37 }
  0xa1   :  { %654 = vmatpush1.bf16.msra.mxu0 %v1620_v56  ;;  %1059 = vmatprep.subr.bf16.mxu1 %v1719_v38 }
  0xa2   :  { %655 = vmatprep.subr.bf16.mxu0 %v1625_v57 }
  0xa4   :  { %1060 = vmatpush1.bf16.msra.mxu1 %v1717_v39 }
  0xa5   :  { %656 = vmatpush1.bf16.msra.mxu0 %v1623_v58  ;;  %1061 = vmatprep.subr.bf16.mxu1 %v1722_v40 }
  0xa6   :  { %657 = vmatprep.subr.bf16.mxu0 %v1628_v59 }
  0xa8   :  { %1062 = vmatpush1.bf16.msra.mxu1 %v1720_v41  ;;  %v785_v41 = vlaneseq }
  0xa9   :  { %658 = vmatpush1.bf16.msra.mxu0 %v1626_v60  ;;  %1063 = vmatprep.subr.bf16.mxu1 %v1725_v42 }
  0xaa   :  { %659 = vmatprep.subr.bf16.mxu0 %v1631_v61 }
  0xac   :  { %1064 = vmatpush1.bf16.msra.mxu1 %v1723_v43 }
  0xad   :  { %660 = vmatpush1.bf16.msra.mxu0 %v1629_v62  ;;  %1065 = vmatprep.subr.bf16.mxu1 %v1728_v44 }
  0xae   :  { %661 = vmatprep.subr.bf16.mxu0 %v1634_v63 }
  0xb0   :  { %1066 = vmatpush1.bf16.msra.mxu1 %v1726_v45 }
  0xb1   :  { %662 = vmatpush1.bf16.msra.mxu0 %v1632_v0  ;;  %1067 = vmatprep.subr.bf16.mxu1 %v1731_v46  ;;  %v786_v46 = vshrl.u32 %v785_v41, 7 }
  0xb2   :  { %663 = vmatprep.subr.bf16.mxu0 %v1637_v1 }
  0xb4   :  { %1068 = vmatpush1.bf16.msra.mxu1 %v1729_v47 }
  0xb5   :  { %664 = vmatpush1.bf16.msra.mxu0 %v1635_v2  ;;  %1069 = vmatprep.subr.bf16.mxu1 %v1734_v48  ;;  %v2035_v48 = vsub.s32 0, %v786_v46 }
  0xb6   :  { %665 = vmatprep.subr.bf16.mxu0 %v1640_v3 }
  0xb8   :  { %1070 = vmatpush1.bf16.msra.mxu1 %v1732_v49  ;;  %v94_v49 = vld [vmem:[#allocation10] ss:$8 sm:$0x3] }
  0xb9   :  { %666 = vmatpush1.bf16.msra.mxu0 %v1638_v4  ;;  %1071 = vmatprep.subr.bf16.mxu1 %v1737_v50  ;;  %v2037_v50 = vsub.s32 1, %v786_v46 }
  0xba   :  { %667 = vmatprep.subr.bf16.mxu0 %v1646_v5 }
  0xbc   :  { %1072 = vmatpush1.bf16.msra.mxu1 %v1735_v51  ;;  %v1917_v51 = vmov 1966171168  }
  0xbd   :  { %668 = vmatpush1.bf16.msra.mxu0 %v1644_v6  ;;  %1073 = vmatprep.subr.bf16.mxu1 %v1740_v52  ;;  %v803_v52 = vunpack.c.l.s4 %v1917_v51 }
  0xbe   :  { %669 = vmatprep.subr.bf16.mxu0 %v1652_v7 }
  0xc0   :  { %1074 = vmatpush1.bf16.msra.mxu1 %v1738_v53  ;;  %v788_v53 = vrot.slane %v94_v49, %v2035_v48 }
  0xc1   :  { %670 = vmatpush1.bf16.msra.mxu0 %v1650_v8 }
  0xc2   :  { %671 = vmatprep.subr.bf16.mxu0 %v1658_v9 }
  0xc5   :  { %672 = vmatpush1.bf16.msra.mxu0 %v1656_v10 }
  0xc6   :  { %673 = vmatprep.subr.bf16.mxu0 %v1664_v11 }
  0xc9   :  { %674 = vmatpush1.bf16.msra.mxu0 %v1662_v12 }
  0xca   :  { %675 = vmatprep.subr.bf16.mxu0 %v1670_v13 }
  0xcd   :  { %676 = vmatpush1.bf16.msra.mxu0 %v1668_v14 }
  0xce   :  { %677 = vmatprep.subr.bf16.mxu0 %v1676_v15 }
  0xd1   :  { %678 = vmatpush1.bf16.msra.mxu0 %v1674_v16 }
  0xd2   :  { %679 = vmatprep.subr.bf16.mxu0 %v1682_v17 }
  0xd5   :  { %680 = vmatpush1.bf16.msra.mxu0 %v1680_v18 }
  0xd6   :  { %681 = vmatprep.subr.bf16.mxu0 %v1688_v19 }
  0xd9   :  { %682 = vmatpush1.bf16.msra.mxu0 %v1686_v20 }
  0xdc   :  { %684 = vmatmul.mubr.bf16.vlgmr.msra.gmra.mrb[0].mxu0 %v1690_v21 }
 0x156   :  { %v728_v54 = vpop.f32.mrb[0].mxu1 }
 0x157   :  { %v730_v55 = vpop.f32.mrb[1].mxu1 }
 0x158   :  { %v732_v56 = vpop.f32.mrb[2].mxu1 }
 0x159   :  { %v734_v57 = vpop.f32.mrb[3].mxu1 }
 0x1af   :  { %v685_v58 = vpop.f32.mrb[0].mxu0 }
 0x1b0   :  { %v2015_v59 = vadd.f32 %v728_v54, %v685_v58  ;;  %v687_v60 = vpop.f32.mrb[1].mxu0  ;;  %v792_v54 = vrot.slane %v94_v49, %v2037_v50 }
 0x1b1   :  { %v2017_v61 = vadd.f32 %v730_v55, %v687_v60  ;;  %v689_v62 = vpop.f32.mrb[2].mxu0 }
 0x1b2   :  { %v2019_v63 = vadd.f32 %v732_v56, %v689_v62  ;;  %v691_v0 = vpop.f32.mrb[3].mxu0  ;;  %v754_v2 = vmul.f32 %v2015_v59, %v2015_v59  ;;  %v804_v56 = vunpack.c.0.s8 %v803_v52 }
 0x1b3   :  { %v2021_v1 = vadd.f32 %v734_v57, %v691_v0  ;;  %v755_v5 = vmul.f32 %v2017_v61, %v2017_v61 }
 0x1b4   :  { %v737_v3 = vadd.f32 %v2019_v63, %v2015_v59  ;;  %v756_v4 = vmul.f32 %v2019_v63, %v2019_v63 }
 0x1b5   :  { %v744_v6 = vadd.f32 %v2021_v1, %v2017_v61  ;;  %v757_v7 = vmul.f32 %v2021_v1, %v2021_v1 }
 0x1b6   :  { %v738_v8 = vrot.slane %v737_v3, 4  ;;  %v758_v9 = vadd.f32 %v756_v4, %v754_v2  ;;  %v2043_v4 = vsub.s32 %v804_v56, %v786_v46 }
 0x1b7   :  { %v745_v10 = vrot.slane %v744_v6, 4  ;;  %v765_v11 = vadd.f32 %v757_v7, %v755_v5 }
 0x1b8   :  { %v739_v12 = vadd.f32 %v738_v8, %v737_v3  ;;  %v759_v13 = vrot.slane %v758_v9, 4 }
 0x1b9   :  { %v746_v14 = vadd.f32 %v745_v10, %v744_v6  ;;  %v766_v15 = vrot.slane %v765_v11, 4 }
 0x1ba   :  { %v740_v16 = vrot.slane %v739_v12, 2  ;;  %v760_v17 = vadd.f32 %v759_v13, %v758_v9 }
 0x1bb   :  { %v747_v18 = vrot.slane %v746_v14, 2  ;;  %v767_v19 = vadd.f32 %v766_v15, %v765_v11  ;;  %v96_v11 = vld [vmem:[#allocation10 + $0x1] ss:$8 sm:$0x3] }
 0x1bc   :  { %v741_v20 = vadd.f32 %v740_v16, %v739_v12  ;;  %v761_v21 = vrot.slane %v760_v17, 2 }
 0x1bd   :  { %v748_v22 = vadd.f32 %v747_v18, %v746_v14  ;;  %v768_v23 = vrot.slane %v767_v19, 2 }
 0x1be   :  { %v742_v24 = vrot.slane %v741_v20, 1  ;;  %v762_v25 = vadd.f32 %v761_v21, %v760_v17 }
 0x1bf   :  { %v749_v26 = vrot.slane %v748_v22, 1  ;;  %v769_v27 = vadd.f32 %v768_v23, %v767_v19  ;;  %v1742_v23 = vld [vmem:[#allocation8] sm:$0xff]  }
 0x1c0   :  { %v743_v28 = vadd.f32 %v742_v24, %v741_v20  ;;  %v763_v29 = vrot.slane %v762_v25, 1  ;;  %v1743_v24 = vld [vmem:[#allocation8 + $0x48] sm:$0xff]  }
 0x1c1   :  { %v750_v30 = vadd.f32 %v749_v26, %v748_v22  ;;  %v770_v31 = vrot.slane %v769_v27, 1  ;;  %v1741_v22 = vld [vmem:[#allocation8 + $0x40] sm:$0xff]   ;;  %v1745_v26 = vld [vmem:[#allocation8 + $0x50] sm:$0xff]  }
 0x1c2   :  { %v752_v32 = vmul.f32 0.0625, %v743_v28  ;;  %v764_v33 = vadd.f32 %v763_v29, %v762_v25  ;;  %1522 = vmatprep.subr.bf16.mxu1 %v1741_v22  ;;  %v1744_v25 = vld [vmem:[#allocation8 + $0x8] sm:$0xff]   ;;  %v1747_v28 = vld [vmem:[#allocation8 + $0x58] sm:$0xff]  }
 0x1c3   :  { %v753_v34 = vmul.f32 0.0625, %v750_v30  ;;  %v771_v35 = vadd.f32 %v770_v31, %v769_v27  ;;  %v1746_v27 = vld [vmem:[#allocation8 + $0x10] sm:$0xff]   ;;  %v1748_v29 = vld [vmem:[#allocation8 + $0x18] sm:$0xff]   ;;  %v1749_v30 = vld [vmem:[#allocation8 + $0x60] sm:$0xff]  }
 0x1c4   :  { %v772_v36 = vmul.f32 0.0625, %v764_v33  ;;  %v774_v37 = vmul.f32 %v752_v32, %v752_v32  ;;  %v1750_v31 = vld [vmem:[#allocation8 + $0x20] sm:$0xff]   ;;  %v1752_v33 = vld [vmem:[#allocation8 + $0x28] sm:$0xff]  }
 0x1c5   :  { %v773_v38 = vmul.f32 0.0625, %v771_v35  ;;  %v775_v39 = vmul.f32 %v753_v34, %v753_v34  ;;  %v1754_v35 = vld [vmem:[#allocation8 + $0x30] sm:$0xff]  }
 0x1c6   :  { %v776_v40 = vsub.f32 %v772_v36, %v774_v37  ;;  %v1755_v36 = vld [vmem:[#allocation8 + $0x78] sm:$0xff]  }
 0x1c7   :  { %v777_v42 = vsub.f32 %v773_v38, %v775_v39  ;;  %v1756_v37 = vld [vmem:[#allocation8 + $0x38] sm:$0xff]  }
 0x1c8   :  { %v778_v43 = vmax.f32 %v776_v40, 0.0 }
 0x1c9   :  { %v779_v44 = vmax.f32 %v777_v42, 0.0 }
 0x1ca   :  { %v780_v45 = vadd.f32 1e-05, %v778_v43 }
 0x1cb   :  { %v781_v47 = vadd.f32 1e-05, %v779_v44 }
 0x1cc   :  { %1757 = vrsqrt.f32 %v780_v45 }
 0x1cd   :  { %1759 = vrsqrt.f32 %v781_v47 }
 0x1d6   :  { %v1758_v55 = vpop.eup %1757 }
 0x1d7   :  { %v1760_v57 = vpop.eup %1759  ;;  %v795_v58 = vmul.f32 %v1758_v55, %v788_v53 }
 0x1d8   :  { %v796_v60 = vmul.f32 %v1760_v57, %v792_v54 }
 0x1d9   :  { %v797_v62 = vmul.f32 %v795_v58, %v752_v32  ;;  %v821_v0 = vrot.slane %v795_v58, %v2035_v48  ;;  %v1751_v32 = vld [vmem:[#allocation8 + $0x68] sm:$0xff]  }
 0x1da   :  { %v798_v2 = vmul.f32 %v796_v60, %v753_v34  ;;  %v825_v3 = vrot.slane %v796_v60, %v2035_v48  ;;  %v1753_v34 = vld [vmem:[#allocation8 + $0x70] sm:$0xff]  }
 0x1db   :  { %v826_v5 = vmul.f32 %v2015_v59, %v821_v0  ;;  %v828_v6 = vmul.f32 %v2019_v63, %v821_v0 }
 0x1dc   :  { %v801_v7 = vcombine.low %v797_v62, %v798_v2  ;;  %v829_v8 = vmul.f32 %v2021_v1, %v825_v3  ;;  %v827_v9 = vmul.f32 %v2017_v61, %v825_v3 }
 0x1de   :  { %v808_v10 = vrot.slane %v801_v7, %v2043_v4 }
 0x1e0   :  { %v815_v12 = vrot.slane %v808_v10, %v2043_v4 }
 0x1e2   :  { %v817_v13 = vsub.f32 %v96_v11, %v815_v12 }
 0x1e4   :  { %v838_v14 = vrot.slane %v817_v13, %v2037_v50  ;;  %v834_v15 = vrot.slane %v817_v13, %v2035_v48 }
 0x1e6   :  { %v842_v16 = vadd.f32 %v838_v14, %v827_v9  ;;  %v844_v17 = vadd.f32 %v838_v14, %v829_v8  ;;  %v841_v59 = vadd.f32 %v834_v15, %v826_v5  ;;  %v843_v18 = vadd.f32 %v834_v15, %v828_v6 }
 0x1e8   :  { %v846_v63 = vmax.f32 %v842_v16, 0.0  ;;  %v848_v19 = vmax.f32 %v844_v17, 0.0  ;;  %v845_v20 = vmax.f32 %v841_v59, 0.0  ;;  %v847_v1 = vmax.f32 %v843_v18, 0.0 }
 0x1ea   :  { %v850_v21 = vpack.c.bf16 %v848_v19, %v846_v63  ;;  %v849_v61 = vpack.c.bf16 %v847_v1, %v845_v20 }
 0x1ec   :  { %1075 = vmatprep.mubr.bf16.mxu1 %v850_v21 }
 0x1ed   :  { %1076 = vmatmul.mubr.bf16.vlgmr.msra.gmra.mrb[4].mxu1 %v849_v61 }
 0x1ee   :  { %1523 = vmatpush3.bf16.msra.mxu1 %v1742_v23 }
 0x1ef   :  { %1524 = vmatprep.subr.bf16.mxu1 %v1743_v24 }
 0x1f2   :  { %1525 = vmatpush3.bf16.msra.mxu1 %v1744_v25  ;;  %v98_v25 = vld [vmem:[#allocation10 + $0x2] ss:$8 sm:$0x3] }
 0x1f3   :  { %1526 = vmatprep.subr.bf16.mxu1 %v1745_v26  ;;  %v1136_v26 = vrot.slane %v98_v25, %v2035_v48 }
 0x1f6   :  { %1527 = vmatpush3.bf16.msra.mxu1 %v1746_v27  ;;  %v1140_v27 = vrot.slane %v98_v25, %v2037_v50 }
 0x1f7   :  { %1528 = vmatprep.subr.bf16.mxu1 %v1747_v28 }
 0x1fa   :  { %1529 = vmatpush3.bf16.msra.mxu1 %v1748_v29 }
 0x1fb   :  { %1530 = vmatprep.subr.bf16.mxu1 %v1749_v30 }
 0x1fe   :  { %1531 = vmatpush3.bf16.msra.mxu1 %v1750_v31 }
 0x1ff   :  { %1532 = vmatprep.subr.bf16.mxu1 %v1751_v32 }
 0x202   :  { %1533 = vmatpush3.bf16.msra.mxu1 %v1752_v33 }
 0x203   :  { %1534 = vmatprep.subr.bf16.mxu1 %v1753_v34 }
 0x206   :  { %1535 = vmatpush3.bf16.msra.mxu1 %v1754_v35 }
 0x207   :  { %1536 = vmatprep.subr.bf16.mxu1 %v1755_v36 }
 0x20a   :  { %1537 = vmatpush3.bf16.msra.mxu1 %v1756_v37 }
 0x2c0   :  { %v1077_v38 = vpop.f32.mrb[4].mxu1 }
 0x2c1   :  { %v2053_v39 = vpop.f32.mrb[5].mxu1  ;;  %v1102_v41 = vmul.f32 %v1077_v38, %v1077_v38 }
 0x2c2   :  { %v1081_v40 = vpop.f32.mrb[6].mxu1  ;;  %v1103_v45 = vmul.f32 %v2053_v39, %v2053_v39 }
 0x2c3   :  { %v1086_v42 = vadd.f32 %v1081_v40, %v1077_v38  ;;  %v1104_v43 = vmul.f32 %v1081_v40, %v1081_v40  ;;  %v1083_v44 = vpop.f32.mrb[7].mxu1 }
 0x2c4   :  { %v1093_v46 = vadd.f32 %v1083_v44, %v2053_v39  ;;  %v1105_v47 = vmul.f32 %v1083_v44, %v1083_v44 }
 0x2c5   :  { %v1087_v49 = vrot.slane %v1086_v42, 4  ;;  %v1106_v51 = vadd.f32 %v1104_v43, %v1102_v41 }
 0x2c6   :  { %v1094_v52 = vrot.slane %v1093_v46, 4  ;;  %v1113_v53 = vadd.f32 %v1105_v47, %v1103_v45 }
 0x2c7   :  { %v1088_v54 = vadd.f32 %v1087_v49, %v1086_v42  ;;  %v1107_v55 = vrot.slane %v1106_v51, 4 }
 0x2c8   :  { %v1095_v56 = vadd.f32 %v1094_v52, %v1093_v46  ;;  %v1114_v57 = vrot.slane %v1113_v53, 4  ;;  %v100_v46 = vld [vmem:[#allocation10 + $0x3] ss:$8 sm:$0x3] }
 0x2c9   :  { %v1089_v58 = vrot.slane %v1088_v54, 2  ;;  %v1108_v60 = vadd.f32 %v1107_v55, %v1106_v51 }
 0x2ca   :  { %v1096_v62 = vrot.slane %v1095_v56, 2  ;;  %v1115_v0 = vadd.f32 %v1114_v57, %v1113_v53 }
 0x2cb   :  { %v1090_v2 = vadd.f32 %v1089_v58, %v1088_v54  ;;  %v1109_v3 = vrot.slane %v1108_v60, 2 }
 0x2cc   :  { %v1097_v5 = vadd.f32 %v1096_v62, %v1095_v56  ;;  %v1116_v6 = vrot.slane %v1115_v0, 2  ;;  %v101_v62 = vld [vmem:[#allocation10 + $0x4] ss:$0 sm:$0xff] }
 0x2cd   :  { %v1091_v7 = vrot.slane %v1090_v2, 1  ;;  %v1110_v8 = vadd.f32 %v1109_v3, %v1108_v60 }
 0x2ce   :  { %v1098_v9 = vrot.slane %v1097_v5, 1  ;;  %v1117_v10 = vadd.f32 %v1116_v6, %v1115_v0 }
 0x2cf   :  { %v1092_v11 = vadd.f32 %v1091_v7, %v1090_v2  ;;  %v1111_v12 = vrot.slane %v1110_v8, 1 }
 0x2d0   :  { %v1099_v13 = vadd.f32 %v1098_v9, %v1097_v5  ;;  %v1118_v14 = vrot.slane %v1117_v10, 1 }
 0x2d1   :  { %v1100_v15 = vmul.f32 0.0625, %v1092_v11  ;;  %v1112_v16 = vadd.f32 %v1111_v12, %v1110_v8 }
 0x2d2   :  { %v1101_v17 = vmul.f32 0.0625, %v1099_v13  ;;  %v1119_v59 = vadd.f32 %v1118_v14, %v1117_v10 }
 0x2d3   :  { %v1120_v18 = vmul.f32 0.0625, %v1112_v16  ;;  %v1122_v63 = vmul.f32 %v1100_v15, %v1100_v15 }
 0x2d4   :  { %v1121_v19 = vmul.f32 0.0625, %v1119_v59  ;;  %v1123_v20 = vmul.f32 %v1101_v17, %v1101_v17 }
 0x2d5   :  { %v1124_v1 = vsub.f32 %v1120_v18, %v1122_v63 }
 0x2d6   :  { %v1125_v21 = vsub.f32 %v1121_v19, %v1123_v20 }
 0x2d7   :  { %v1126_v61 = vmax.f32 %v1124_v1, 0.0 }
 0x2d8   :  { %v1127_v22 = vmax.f32 %v1125_v21, 0.0 }
 0x2d9   :  { %v1128_v23 = vadd.f32 1e-05, %v1126_v61 }
 0x2da   :  { %v1129_v24 = vadd.f32 1e-05, %v1127_v22 }
 0x2db   :  { %1761 = vrsqrt.f32 %v1128_v23 }
 0x2dc   :  { %1763 = vrsqrt.f32 %v1129_v24 }
 0x2e5   :  { %v1762_v28 = vpop.eup %1761 }
 0x2e6   :  { %v1764_v29 = vpop.eup %1763  ;;  %v1143_v30 = vmul.f32 %v1762_v28, %v1136_v26 }
 0x2e7   :  { %v1144_v31 = vmul.f32 %v1764_v29, %v1140_v27 }
 0x2e8   :  { %v1145_v32 = vmul.f32 %v1143_v30, %v1100_v15  ;;  %v1169_v33 = vrot.slane %v1143_v30, %v2035_v48 }
 0x2e9   :  { %v1146_v34 = vmul.f32 %v1144_v31, %v1101_v17  ;;  %v1173_v35 = vrot.slane %v1144_v31, %v2035_v48 }
 0x2ea   :  { %v1174_v36 = vmul.f32 %v1169_v33, %v1077_v38  ;;  %v1176_v37 = vmul.f32 %v1169_v33, %v1081_v40 }
 0x2eb   :  { %v1149_v41 = vcombine.low %v1145_v32, %v1146_v34  ;;  %v1175_v42 = vmul.f32 %v1173_v35, %v2053_v39  ;;  %v1177_v43 = vmul.f32 %v1173_v35, %v1083_v44 }
 0x2ed   :  { %v1156_v45 = vrot.slane %v1149_v41, %v2043_v4 }
 0x2ef   :  { %v1163_v47 = vrot.slane %v1156_v45, %v2043_v4 }
 0x2f1   :  { %v1165_v49 = vsub.f32 %v100_v46, %v1163_v47 }
 0x2f3   :  { %v1182_v51 = vrot.slane %v1165_v49, %v2035_v48  ;;  %v1186_v52 = vrot.slane %v1165_v49, %v2037_v50 }
 0x2f5   :  { %v1192_v53 = vadd.f32 %v1186_v52, %v1177_v43  ;;  %v1190_v54 = vadd.f32 %v1186_v52, %v1175_v42  ;;  %v1189_v55 = vadd.f32 %v1182_v51, %v1174_v36  ;;  %v1191_v56 = vadd.f32 %v1182_v51, %v1176_v37 }
 0x2f7   :  { %v1194_v38 = vmax.f32 %v1190_v54, 0.0  ;;  %v1196_v40 = vmax.f32 %v1192_v53, 0.0  ;;  %v1193_v57 = vmax.f32 %v1189_v55, 0.0  ;;  %v1195_v58 = vmax.f32 %v1191_v56, 0.0 }
 0x2f9   :  { %v1198_v39 = vpack.c.bf16 %v1196_v40, %v1194_v38  ;;  %v1197_v44 = vpack.c.bf16 %v1195_v58, %v1193_v57 }
 0x2fb   :  { %1359 = vmatprep.mubr.bf16.mxu1 %v1198_v39 }
 0x2fc   :  { %1360 = vmatmul.mubr.bf16.vlgmr.msra.gmra.mrb[8].mxu1 %v1197_v44 }
 0x3cf   :  { %v1538_v60 = vpop.f32.mrb[8].mxu1 }
 0x3d0   :  { %v1539_v4 = vpop.f32.mrb[9].mxu1 }
 0x3d1   :  { %v1540_v0 = vadd.f32 %v1539_v4, %v1538_v60  ;;  %v1541_v2 = vpop.f32.mrb[10].mxu1 }
 0x3d2   :  { %v1542_v48 = vpop.f32.mrb[11].mxu1 }
 0x3d3   :  { %v1362_v50 = vadd.f32 %v1540_v0, %v101_v62  ;;  %v1543_v3 = vadd.f32 %v1542_v48, %v1541_v2 }
 0x3d5   :  { %1368 = vst [vmem:[#allocation11] sm:$0xff] %v1362_v50  ;;  %v1365_v5 = vadd.f32 %v1543_v3, %v101_v62 }
 0x3d7   :  { %1369 = vst [vmem:[#allocation11 + $0x8] sm:$0xff] %v1365_v5 }
 0x3d8   :  { %1886 = shalt.err (!%p1883_p2)
}
 0x3d9   :  { %s1887_s11 = scalar_lea.hbm %s2087_s5, 256 }
 0x3da   :  { %p1888_p3 = scmp.ne.s32.totalorder %s2087_s5, %s1887_s11  ;;  %p1891_p4 = scmp.lt.u32.totalorder %s1887_s11, %s2087_s5 }
 0x3dc   :  { %p1893_p5 = pnand %p1891_p4, %p1888_p3 }
 0x3de   :  { %1896 = shalt.err (!%p1893_p5)
}
 0x3df   :  { %1381 = dma.vmem_to_hbm [thread:$0]  %s1376_s7, 256, %s2087_s5, [#allocation4], %s1906_s28, %s1906_s28, %s1907_s29  }
 0x3e0   :  { %1903 = dma.done.wait [#allocation4], 256  }
 0x3e1   :  { %1904 = vsyncadd [#allocation4], 4294967040 }
 0x3e2   :  { %1385 = vsyncpa [#allocation3], 1 }
 0x3e3   :  { %1386 = vsyncpa [#allocation6], 1 }
 0x3e4   :  { %1387 = vsyncpa [#allocation9], 1 }
 0x3e5   :  { %1388 = vsyncpa [#allocation4], 1 }

</bundles_post_ra>
